<compile_context>
chip_gen: v5e
topology: v5e:2x2
jax: 0.10.0
libtpu: 0.0.40
codegen_flags: <defaults>
</compile_context>

<pallas_src>
import math

import jax
import jax.numpy as jnp
from jax.experimental import pallas as pl
from jax.experimental.pallas import tpu as pltpu

_LANES = 128
_MAX_TILE_ROWS = 512  # 512 * 128 * 4 B = 256 KiB per buffer (double-buffered: 512 KiB)


# ---------------------------------------------------------------------------
# Pallas kernel
# ---------------------------------------------------------------------------
def _relu_kernel(x_ref, o_ref):
    # x_ref / o_ref: (1, tile_rows, 128) lane-dense f32 tiles.
    o_ref[...] = jnp.maximum(x_ref[...], 0.0)


# ---------------------------------------------------------------------------
# Wrapper
# ---------------------------------------------------------------------------
def complex_relu(x):
    """relu(x.real) + 1j * relu(x.imag) for a complex array of any shape."""
    shape = x.shape
    total = math.prod(shape)

    # Lane-dense layout: flatten -> (rows, 128), rows padded to a tile multiple.
    rows_needed = pl.cdiv(total, _LANES)
    tile_rows = min(_MAX_TILE_ROWS, max(8, ((rows_needed + 7) // 8) * 8))
    padded_rows = pl.cdiv(rows_needed, tile_rows) * tile_rows
    padded_total = padded_rows * _LANES

    # Stack real/imag on a leading axis: one input array, one output array.
    flat = jnp.stack([jnp.real(x), jnp.imag(x)]).astype(jnp.float32).reshape(2, total)
    flat = jnp.pad(flat, ((0, 0), (0, padded_total - total)))
    arr = flat.reshape(2, padded_rows, _LANES)

    out = pl.pallas_call(
        _relu_kernel,
        out_shape=jax.ShapeDtypeStruct((2, padded_rows, _LANES), jnp.float32),
        grid=(2, padded_rows // tile_rows),
        in_specs=[pl.BlockSpec((1, tile_rows, _LANES), lambda i, j: (i, j, 0))],
        out_specs=pl.BlockSpec((1, tile_rows, _LANES), lambda i, j: (i, j, 0)),
        compiler_params=pltpu.CompilerParams(
            dimension_semantics=("parallel", "parallel")),
    )(arr)

    out_flat = out.reshape(2, padded_total)[:, :total]
    return jax.lax.complex(out_flat[0].reshape(shape), out_flat[1].reshape(shape))


# ---------------------------------------------------------------------------
if __name__ == "__main__":
    key = jax.random.PRNGKey(0)
    k1, k2 = jax.random.split(key)

    B, C, H, W = 2, 4, 16, 16
    xr = jax.random.normal(k1, (B, C, H, W), jnp.float32)
    xi = jax.random.normal(k2, (B, C, H, W), jnp.float32)
    x = jax.lax.complex(xr, xi)

    out = complex_relu(x)
    out = jax.block_until_ready(out)

    ref = jax.lax.complex(jnp.maximum(xr, 0.0), jnp.maximum(xi, 0.0))
    assert out.shape == x.shape and jnp.iscomplexobj(out)
    assert jnp.allclose(out, ref), "mismatch vs reference complex ReLU"
    print("KERNEL_OK")
</pallas_src>

<mosaic_0001>
module attributes {stable_mosaic.version = 11 : i64} {
  func.func @_relu_kernel(%arg0: i32, %arg1: i32, %arg2: memref<1x16x128xf32, #tpu.memory_space<vmem>>, %arg3: memref<1x16x128xf32, #tpu.memory_space<vmem>>) attributes {dimension_semantics = [#tpu.dimension_semantics<parallel>, #tpu.dimension_semantics<parallel>], iteration_bounds = array<i64: 2, 1>, scalar_prefetch = 0 : i64, scratch_operands = 0 : i64, tpu.core_type = #tpu.core_type<tc>, window_params = [{transform_indices = @transform_0, window_bounds = array<i64: 1, 16, 128>}, {transform_indices = @transform_1, window_bounds = array<i64: 1, 16, 128>}]} {
    %c0 = arith.constant 0 : index
    %c0_0 = arith.constant 0 : index
    %c0_1 = arith.constant 0 : index
    %0 = vector.load %arg2[%c0, %c0_0, %c0_1] : memref<1x16x128xf32, #tpu.memory_space<vmem>>, vector<1x16x128xf32>
    %cst = arith.constant 0.000000e+00 : f32
    %1 = vector.broadcast %cst : f32 to vector<1x16x128xf32>
    %2 = arith.maximumf %0, %1 : vector<1x16x128xf32>
    %c0_2 = arith.constant 0 : index
    %c0_3 = arith.constant 0 : index
    %c0_4 = arith.constant 0 : index
    %3 = vector.load %arg3[%c0_2, %c0_3, %c0_4] : memref<1x16x128xf32, #tpu.memory_space<vmem>>, vector<1x16x128xf32>
    tpu.vector_store %arg3[%c0_2, %c0_3, %c0_4], %2 {strides = array<i32>} : memref<1x16x128xf32, #tpu.memory_space<vmem>>, vector<1x16x128xf32>,
    return
  }
  func.func @transform_0(%arg0: i32, %arg1: i32) -> (i32, i32, i32) {
    %c0_i32 = arith.constant 0 : i32
    %c0_i32_0 = arith.constant 0 : i32
    return %arg0, %arg1, %c0_i32 : i32, i32, i32
  }
  func.func @transform_1(%arg0: i32, %arg1: i32) -> (i32, i32, i32) {
    %c0_i32 = arith.constant 0 : i32
    %c0_i32_0 = arith.constant 0 : i32
    return %arg0, %arg1, %c0_i32 : i32, i32, i32
  }
}

</mosaic_0001>

<bundles_post_ra>
// kernel: tpu_custom_call.1
= control target key start
LH: loop header
LB: loop body
LE: loop exit
PB: predicated region body
PF: predicated region fallthrough
CT: control target
= control target key end

     0   :  { %6 = vsyncpa [#allocation3], 0  ;;  %s599_s0 = inlined_call_operand.hbm [shape: f32[2,16,128], index: 0, kind: input, shape index: {}]   ;;  %s600_s1 = inlined_call_operand.hbm [shape: f32[2,16,128], index: 1, kind: output, shape index: {}]  }
   0x1   :  { %8 = vsyncpa [#allocation3 + $0x1], 0 }
   0x2   :  { %9 = vsyncpa [#allocation4], 0 }
   0x3   :  { %11 = vsyncpa [#allocation4 + $0x1], 0  ;;  %s479_s6 = smov 0   ;;  %s481_s7 = smov 0  }
   0x4   :  { %s483_s8 = smov 0   ;;  %s485_s9 = smov 0  }
   0x5   :  { %s487_s10 = smov 0   ;;  %s489_s11 = smov 0  }
   0x6 LB: > { %s268_s12 = sadd.s32 4294967295, %s463_s11   ;;  %s269_s13 = sadd.s32 4294967294, %s463_s11   ;;  %s463_s11 = sphi %s489_s11, %s17_s11   ;;  %s459_s10 = sphi %s487_s10, %s609_s10   ;;  %s455_s9 = sphi %s485_s9, %s608_s9   ;;  %s451_s8 = sphi %s483_s8, %s607_s8   ;;  %s447_s7 = sphi %s481_s7, %s606_s7   ;;  %s443_s6 = sphi %s479_s6, %s605_s6  }
   0x7   : > { %s29_s14 = sadd.s32 1, %s459_s10  ;;  %s38_s15 = sadd.s32 1, %s451_s8 }
   0x8   : > { %p31_p0 = scmp.ge.s32.totalorder %s29_s14, 2  ;;  %p45_p1 = scmp.ne.s32.totalorder %s451_s8, %s447_s7 }
   0x9   : > { %p46_p2 = scmp.eq.s32.totalorder %s463_s11, 0  ;;  %p51_p3 = scmp.ne.s32.totalorder %s447_s7, %s443_s6 }
   0xa   : > { %s611_s14 = smov (%p31_p0, %s29_s14), 0  ;;  %p52_p5 = scmp.eq.s32.totalorder %s268_s12, 0 }
   0xb   : > { %p520_p4 = por %p46_p2, %p45_p1  ;;  %s33_s17 = ssub.s32 %s459_s10, %s611_s14 }
   0xc   : > { %p77_p6 = scmp.eq.s32.totalorder %s268_s12, 1  ;;  %p36_p7 = scmp.eq.s32.totalorder %s33_s17, 0 }
   0xd   : > { %p526_p8 = por %p52_p5, %p51_p3  ;;  %p83_p10 = scmp.eq.s32.totalorder %s269_s13, 1 }
   0xe   : > { %p530_p9 = por %p77_p6, %p45_p1  ;;  %p271_p12 = scmp.ge.s32.totalorder %s463_s11, 2 }
   0xf   : > { %s535_s20 = scalar_select %p36_p7, %s451_s8, %s38_s15  }
  0x10   : > { %p537_p11 = por %p83_p10, %p51_p3  ;;  %p297_p13 = scmp.lt.s32.totalorder %s463_s11, 2 }
  0x11   : > { %s103_s22 = sand.u32 1, %s451_s8   ;;  %s283_s24 = sshll.u32 %s459_s10, 4 }
  0x12   : > { %s272_s23 = sshll.u32 %s103_s22, 4  ;;  %s114_s27 = scalar_lea.hbm %s599_s0, %s283_s24 }
  0x13   : > { %s107_s28 = scalar_lea.vmem [#allocation2], %s272_s23  ;;  %s115_s30 = sshll.u32 %s114_s27, 4  ;;  %s116_s30 = int_to_ptr.hbm [resolvable:$true] %s115_s30 }
  0x14   : > { %s117_s29 = sshll.u32 %s107_s28, 4  ;;  %p290_p0 = pnand %p297_p13, %p520_p4  ;;  %s118_s29 = int_to_ptr.vmem [resolvable:$true] %s117_s29 }
  0x15   : > { %p275_p1 = scmp.ge.s32.totalorder %s463_s11, 1  ;;  %s104_s2 = scalar_lea.sflag [#allocation3], %s103_s22 }
  0x16   : > { %s465_s3 = smov 128   ;;  %s466_s4 = smov 8  }
  0x17   : > { %292 = dma.hbm_to_vmem [thread:$0]  (!%p290_p0), %s116_s30, 256, %s118_s29, %s104_s2, %s465_s3, %s465_s3, %s466_s4  }
  0x18   : > { %p125_p2 = scmp.lt.s32.totalorder %s463_s11, 3 }
  0x1a   : > { %p126_p3 = pnand %p275_p1, %p125_p2 }
  0x1b   : > { %s553_s5 = sand.u32 (!%p126_p3), 1, %s447_s7  }
  0x1c   : > { %129 = sbr.rel (%p126_p3) target bundleno = 50 (0x32), region = 24  ;;  %s276_s12 = sshll.u32 (!%p126_p3), %s553_s5, 4 }
  0x1d   : > { %s132_s13 = scalar_lea.sflag (!%p126_p3), [#allocation3], %s553_s5  ;;  %s135_s15 = scalar_lea.vmem (!%p126_p3), [#allocation2], %s276_s12 }
  0x21   : > { %434 = dma.done.wait (%p526_p8), %s132_s13, 256  }
  0x22   : > { %436 = vsyncadd (%p526_p8), %s132_s13, 4294967040  ;;  %s284_s16 = sshll.u32 %s455_s9, 4  ;;  %s154_s24 = scalar_lea.vmem [#allocation5], %s276_s12  ;;  %v157_v0 = vld [vmem:[%s135_s15] sm:$0xff]  ;;  %v158_v1 = vld [vmem:[%s135_s15 + $0x8] sm:$0xff] }
  0x23   : > { %s177_s23 = scalar_lea.hbm %s600_s1, %s284_s16  ;;  %s178_s25 = sshll.u32 %s154_s24, 4  ;;  %v159_v2 = vmax.f32 %v157_v0, 0.0  ;;  %v160_v3 = vmax.f32 %v158_v1, 0.0  ;;  %s179_s25 = int_to_ptr.vmem [resolvable:$true] %s178_s25 }
  0x24   : > { %s180_s26 = sshll.u32 %s177_s23, 4  ;;  %s164_s18 = scalar_lea.sflag [#allocation4], %s553_s5  ;;  %s181_s26 = int_to_ptr.hbm [resolvable:$true] %s180_s26 }
  0x25   : > { %161 = vst [vmem:[%s154_s24] sm:$0xff] %v159_v2  ;;  %s395_s27 = sshra.s32 %s181_s26, 4  ;;  %s401_s30 = scalar_lea.hbm %s600_s1, 32  ;;  %s396_s27 = int_to_ptr.hbm [resolvable:$true] %s395_s27 }
  0x26   : > { %162 = vst [vmem:[%s154_s24 + $0x8] sm:$0xff] %v160_v3  ;;  %s397_s9 = scalar_lea.hbm %s396_s27, 16  ;;  %p402_p7 = scmp.lt.s32.totalorder %s396_s27, %s600_s1 }
  0x27   : > { %p398_p4 = scmp.ne.s32.totalorder %s396_s27, %s397_s9  ;;  %p403_p8 = scmp.lt.s32.totalorder %s401_s30, %s397_s9 }
  0x29   : > { %p399_p5 = pnand %p398_p4, %p530_p9  ;;  %p404_p10 = por %p403_p8, %p402_p7 }
  0x2b   : > { %p400_p6 = pneg %p399_p5 }
  0x2d   : > { %p405_p13 = pnand %p404_p10, %p400_p6 }
  0x2f   : > { %408 = shalt.err (!%p405_p13)
}
  0x30   : > { %s467_s4 = smov 128   ;;  %s468_s5 = smov 8  }
  0x31   : > { %287 = dma.vmem_to_hbm [thread:$0]  (%p530_p9), %s179_s25, 256, %s181_s26, %s164_s18, %s467_s4, %s467_s4, %s468_s5  }
  0x32 PF: > { %s195_s12 = sand.u32 1, %s443_s6   ;;  %p294_p0 = pnand %p271_p12, %p537_p11 }
  0x33   : > { %s196_s13 = scalar_lea.sflag [#allocation4], %s195_s12 }
  0x34   : > { %p295_p1 = pneg %p294_p0 }
  0x36   : > { %438 = dma.done.wait (%p295_p1), %s196_s13, 256  }
  0x37   : > { %440 = vsyncadd (%p295_p1), %s196_s13, 4294967040  ;;  %s17_s11 = sadd.s32 1, %s463_s11   ;;  %s605_s6 = smov %s447_s7 }
  0x38   : > { %p14_p2 = scmp.ge.s32.totalorder %s17_s11, 4   ;;  %s606_s7 = smov %s451_s8 }
  0x39   : > { %s607_s8 = smov %s535_s20  ;;  %s608_s9 = smov %s459_s10 }
  0x3a   : > { %s609_s10 = smov %s611_s14  ;;  %16 = sbr.rel (!%p14_p2) target bundleno = 6 (0x6), region = 69 }
  0x3f   :  { %202 = vsyncpa [#allocation3], 1 }
  0x40   :  { %204 = vsyncpa [#allocation3 + $0x1], 1 }
  0x41   :  { %205 = vsyncpa [#allocation4], 1 }
  0x42   :  { %207 = vsyncpa [#allocation4 + $0x1], 1 }

</bundles_post_ra>
